<compile_context>
chip_gen: v5e
topology: v5e:2x2
jax: 0.10.0
libtpu: 0.0.40
codegen_flags: <defaults>
</compile_context>

<pallas_src>
import jax
import jax.numpy as jnp
import numpy as np
from jax import lax
from jax.experimental import pallas as pl
from jax.experimental.pallas import tpu as pltpu


def _mask_pool_kernel(x_ref, m_ref, o_ref, d_ref, acc_ref, cnt_ref):
    # x_ref: [1, C_pad, TN]   m_ref: [1, TQ, TN]
    # o_ref: [1, TQ, C_pad]   d_ref: [1, TQ, 1]
    # acc_ref: [TQ, C_pad] f32   cnt_ref: [TQ, 1] f32
    k = pl.program_id(2)

    @pl.when(k == 0)
    def _init():
        acc_ref[...] = jnp.zeros_like(acc_ref)
        cnt_ref[...] = jnp.zeros_like(cnt_ref)

    x = x_ref[0]                                  # [C_pad, TN], native dtype
    m = m_ref[0]                                  # [TQ, TN]
    pos = m > 0                                   # binarize (no grad anyway)
    mb = pos.astype(x.dtype)                      # 0/1 in x's dtype (bf16-friendly)

    # Contract on the shared last dim TN: [TQ,TN] . [C_pad,TN]^T -> [TQ,C_pad]
    acc_ref[...] += lax.dot_general(
        mb, x, (((1,), (1,)), ((), ())),
        preferred_element_type=jnp.float32)

    # Running mask-pixel count per query (f32 accumulate).
    cnt_ref[...] += pos.astype(jnp.float32).sum(axis=-1, keepdims=True)

    @pl.when(k == pl.num_programs(2) - 1)
    def _finish():
        denorm = cnt_ref[...] + 1e-8              # [TQ, 1]
        inv = pl.reciprocal(denorm, approx=False)
        o_ref[0] = (acc_ref[...] * inv).astype(o_ref.dtype)
        d_ref[0] = denorm.astype(d_ref.dtype)


def _round_up(v, m):
    return (v + m - 1) // m * m


def mask_pooling(x, mask, return_num=False, *, tn=512):
    """x: [B, C, H, W], mask: [B, Q, H, W] -> [B, Q, C] (and denorm if asked)."""
    B, C, H, W = x.shape
    Bm, Q, Hm, Wm = mask.shape
    assert B == Bm, "batch sizes must match"
    # TODO(synk): bilinear resize of the mask (F.interpolate) not implemented.
    assert (H, W) == (Hm, Wm), "spatial sizes must match (no interpolate)"
    N = H * W

    # Tile sizes: TN multiple of 128 (lanes), TQ/C multiples of 8 (sublanes).
    TN = min(tn, _round_up(N, 128))
    N_pad = _round_up(N, TN)
    C_pad = _round_up(C, 8)
    TQ = min(_round_up(Q, 8), 128)
    Q_pad = _round_up(Q, TQ)

    # Glue: flatten spatial dims only (no HBM transpose of x).
    x_k = x.reshape(B, C, N)
    m_k = mask.reshape(B, Q, N)
    if (C_pad, N_pad) != (C, N):
        x_k = jnp.pad(x_k, ((0, 0), (0, C_pad - C), (0, N_pad - N)))
    if (Q_pad, N_pad) != (Q, N):
        # zero-padded mask entries give (0 > 0) == False -> contribute nothing
        m_k = jnp.pad(m_k, ((0, 0), (0, Q_pad - Q), (0, N_pad - N)))

    k_tiles = N_pad // TN
    q_tiles = Q_pad // TQ

    out_pad, den_pad = pl.pallas_call(
        _mask_pool_kernel,
        out_shape=(
            jax.ShapeDtypeStruct((B, Q_pad, C_pad), x.dtype),
            jax.ShapeDtypeStruct((B, Q_pad, 1), jnp.float32),
        ),
        grid_spec=pltpu.PrefetchScalarGridSpec(
            num_scalar_prefetch=0,
            grid=(B, q_tiles, k_tiles),
            in_specs=[
                pl.BlockSpec((1, C_pad, TN), lambda b, q, k: (b, 0, k)),
                pl.BlockSpec((1, TQ, TN), lambda b, q, k: (b, q, k)),
            ],
            out_specs=[
                pl.BlockSpec((1, TQ, C_pad), lambda b, q, k: (b, q, 0)),
                pl.BlockSpec((1, TQ, 1), lambda b, q, k: (b, q, 0)),
            ],
            scratch_shapes=[
                pltpu.VMEM((TQ, C_pad), jnp.float32),
                pltpu.VMEM((TQ, 1), jnp.float32),
            ],
        ),
        compiler_params=pltpu.CompilerParams(
            dimension_semantics=("parallel", "parallel", "arbitrary")),
    )(x_k, m_k)

    out = out_pad[:, :Q, :C]
    if return_num:
        denorm = den_pad[:, :Q, :].astype(mask.dtype).reshape(B, Q, 1, 1)
        return out, denorm
    return out


def _reference(x, mask):
    mb = (mask > 0).astype(mask.dtype)
    denorm = mb.sum(axis=(-1, -2), keepdims=True) + 1e-8
    return jnp.einsum('bchw,bqhw->bqc', x, mb / denorm), denorm


if __name__ == "__main__":
    key = jax.random.PRNGKey(0)
    kx, km = jax.random.split(key)
    B, C, Q, H, W = 2, 4, 8, 16, 16
    x = jax.random.normal(kx, (B, C, H, W), dtype=jnp.float32)
    # mask logits: roughly half positive
    mask = jax.random.normal(km, (B, Q, H, W), dtype=jnp.float32)

    out, den = mask_pooling(x, mask, return_num=True)
    out = jax.block_until_ready(out)
    den = jax.block_until_ready(den)

    ref_out, ref_den = _reference(x, mask)
    np.testing.assert_allclose(np.asarray(out), np.asarray(ref_out),
                               rtol=1e-5, atol=1e-5)
    np.testing.assert_allclose(np.asarray(den), np.asarray(ref_den),
                               rtol=1e-6, atol=1e-6)
    print("KERNEL_OK")
</pallas_src>

<mosaic_0001>
module attributes {stable_mosaic.version = 11 : i64} {
  func.func @_mask_pool_kernel(%arg0: i32, %arg1: i32, %arg2: i32, %arg3: memref<1x8x256xf32, #tpu.memory_space<vmem>>, %arg4: memref<1x8x256xf32, #tpu.memory_space<vmem>>, %arg5: memref<1x8x8xf32, #tpu.memory_space<vmem>>, %arg6: memref<1x8x1xf32, #tpu.memory_space<vmem>>, %arg7: memref<8x8xf32, #tpu.memory_space<vmem>>, %arg8: memref<8x1xf32, #tpu.memory_space<vmem>>) attributes {dimension_semantics = [#tpu.dimension_semantics<parallel>, #tpu.dimension_semantics<parallel>, #tpu.dimension_semantics<arbitrary>], iteration_bounds = array<i64: 2, 1, 1>, scalar_prefetch = 0 : i64, scratch_operands = 2 : i64, tpu.core_type = #tpu.core_type<tc>, window_params = [{transform_indices = @transform_0, window_bounds = array<i64: 1, 8, 256>}, {transform_indices = @transform_1, window_bounds = array<i64: 1, 8, 256>}, {transform_indices = @transform_2, window_bounds = array<i64: 1, 8, 8>}, {transform_indices = @transform_3, window_bounds = array<i64: 1, 8, 1>}]} {
    %c0_i32 = arith.constant 0 : i32
    %0 = arith.cmpi eq, %arg2, %c0_i32 : i32
    %1 = arith.extui %0 : i1 to i32
    %c0_i32_0 = arith.constant 0 : i32
    %2 = arith.cmpi ne, %1, %c0_i32_0 : i32
    scf.if %2 {
      %cst_18 = arith.constant 0.000000e+00 : f32
      %25 = vector.broadcast %cst_18 : f32 to vector<8x8xf32>
      %c0_19 = arith.constant 0 : index
      %c0_20 = arith.constant 0 : index
      %26 = vector.load %arg7[%c0_19, %c0_20] : memref<8x8xf32, #tpu.memory_space<vmem>>, vector<8x8xf32>
      tpu.vector_store %arg7[%c0_19, %c0_20], %25 {strides = array<i32>} : memref<8x8xf32, #tpu.memory_space<vmem>>, vector<8x8xf32>,
      %cst_21 = arith.constant 0.000000e+00 : f32
      %27 = vector.broadcast %cst_21 : f32 to vector<8x1xf32>
      %c0_22 = arith.constant 0 : index
      %c0_23 = arith.constant 0 : index
      %28 = vector.load %arg8[%c0_22, %c0_23] : memref<8x1xf32, #tpu.memory_space<vmem>>, vector<8x1xf32>
      tpu.vector_store %arg8[%c0_22, %c0_23], %27 {strides = array<i32>} : memref<8x1xf32, #tpu.memory_space<vmem>>, vector<8x1xf32>,
    } else {
    }
    %c0 = arith.constant 0 : index
    %c0_1 = arith.constant 0 : index
    %c0_2 = arith.constant 0 : index
    %3 = vector.load %arg3[%c0, %c0_1, %c0_2] : memref<1x8x256xf32, #tpu.memory_space<vmem>>, vector<1x8x256xf32>
    %4 = vector.shape_cast %3 : vector<1x8x256xf32> to vector<8x256xf32>
    %c0_3 = arith.constant 0 : index
    %c0_4 = arith.constant 0 : index
    %c0_5 = arith.constant 0 : index
    %5 = vector.load %arg4[%c0_3, %c0_4, %c0_5] : memref<1x8x256xf32, #tpu.memory_space<vmem>>, vector<1x8x256xf32>
    %6 = vector.shape_cast %5 : vector<1x8x256xf32> to vector<8x256xf32>
    %cst = arith.constant 0.000000e+00 : f32
    %7 = vector.broadcast %cst : f32 to vector<8x256xf32>
    %8 = arith.cmpf ogt, %6, %7 : vector<8x256xf32>
    %9 = arith.extui %8 : vector<8x256xi1> to vector<8x256xi32>
    %10 = arith.sitofp %9 : vector<8x256xi32> to vector<8x256xf32>
    %c0_6 = arith.constant 0 : index
    %c0_7 = arith.constant 0 : index
    %11 = vector.load %arg7[%c0_6, %c0_7] : memref<8x8xf32, #tpu.memory_space<vmem>>, vector<8x8xf32>
    %cst_8 = arith.constant dense<0.000000e+00> : vector<8x8xf32>
    %12 = tpu.matmul %10, %4, %cst_8 {dimension_numbers = #tpu.dot_dimension_numbers<[1], [1], [0], [0], [0, 0, 1, 0], [], []>} : vector<8x256xf32>, vector<8x256xf32>, vector<8x8xf32> -> vector<8x8xf32>
    %13 = arith.addf %11, %12 : vector<8x8xf32>
    %c0_9 = arith.constant 0 : index
    %c0_10 = arith.constant 0 : index
    %14 = vector.load %arg7[%c0_9, %c0_10] : memref<8x8xf32, #tpu.memory_space<vmem>>, vector<8x8xf32>
    tpu.vector_store %arg7[%c0_9, %c0_10], %13 {strides = array<i32>} : memref<8x8xf32, #tpu.memory_space<vmem>>, vector<8x8xf32>,
    %c0_11 = arith.constant 0 : index
    %c0_12 = arith.constant 0 : index
    %15 = vector.load %arg8[%c0_11, %c0_12] : memref<8x1xf32, #tpu.memory_space<vmem>>, vector<8x1xf32>
    %16 = arith.extui %8 : vector<8x256xi1> to vector<8x256xi32>
    %17 = arith.sitofp %16 : vector<8x256xi32> to vector<8x256xf32>
    %cst_13 = arith.constant dense<0.000000e+00> : vector<8xf32>
    %18 = vector.multi_reduction <add>, %17, %cst_13 [1] : vector<8x256xf32> to vector<8xf32>
    %19 = vector.shape_cast %18 : vector<8xf32> to vector<8x1xf32>
    %20 = arith.addf %15, %19 : vector<8x1xf32>
    %c0_14 = arith.constant 0 : index
    %c0_15 = arith.constant 0 : index
    %21 = vector.load %arg8[%c0_14, %c0_15] : memref<8x1xf32, #tpu.memory_space<vmem>>, vector<8x1xf32>
    tpu.vector_store %arg8[%c0_14, %c0_15], %20 {strides = array<i32>} : memref<8x1xf32, #tpu.memory_space<vmem>>, vector<8x1xf32>,
    %c0_i32_16 = arith.constant 0 : i32
    %22 = arith.cmpi eq, %arg2, %c0_i32_16 : i32
    %23 = arith.extui %22 : i1 to i32
    %c0_i32_17 = arith.constant 0 : i32
    %24 = arith.cmpi ne, %23, %c0_i32_17 : i32
    scf.if %24 {
      %c0_18 = arith.constant 0 : index
      %c0_19 = arith.constant 0 : index
      %25 = vector.load %arg8[%c0_18, %c0_19] : memref<8x1xf32, #tpu.memory_space<vmem>>, vector<8x1xf32>
      %cst_20 = arith.constant 9.99999993E-9 : f32
      %26 = vector.broadcast %cst_20 : f32 to vector<8x1xf32>
      %27 = arith.addf %25, %26 : vector<8x1xf32>
      %28 = tpu.reciprocal %27 : vector<8x1xf32> -> vector<8x1xf32>
      %c0_21 = arith.constant 0 : index
      %c0_22 = arith.constant 0 : index
      %29 = vector.load %arg7[%c0_21, %c0_22] : memref<8x8xf32, #tpu.memory_space<vmem>>, vector<8x8xf32>
      %30 = vector.broadcast %28 : vector<8x1xf32> to vector<8x8xf32>
      %31 = arith.mulf %29, %30 : vector<8x8xf32>
      %c0_23 = arith.constant 0 : index
      %c0_24 = arith.constant 0 : index
      %c0_25 = arith.constant 0 : index
      %32 = vector.load %arg5[%c0_23, %c0_24, %c0_25] : memref<1x8x8xf32, #tpu.memory_space<vmem>>, vector<1x8x8xf32>
      %33 = vector.shape_cast %32 : vector<1x8x8xf32> to vector<8x8xf32>
      %34 = vector.shape_cast %31 : vector<8x8xf32> to vector<1x8x8xf32>
      tpu.vector_store %arg5[%c0_23, %c0_24, %c0_25], %34 {strides = array<i32>} : memref<1x8x8xf32, #tpu.memory_space<vmem>>, vector<1x8x8xf32>,
      %c0_26 = arith.constant 0 : index
      %c0_27 = arith.constant 0 : index
      %c0_28 = arith.constant 0 : index
      %35 = vector.load %arg6[%c0_26, %c0_27, %c0_28] : memref<1x8x1xf32, #tpu.memory_space<vmem>>, vector<1x8x1xf32>
      %36 = vector.shape_cast %35 : vector<1x8x1xf32> to vector<8x1xf32>
      %37 = vector.shape_cast %27 : vector<8x1xf32> to vector<1x8x1xf32>
      tpu.vector_store %arg6[%c0_26, %c0_27, %c0_28], %37 {strides = array<i32>} : memref<1x8x1xf32, #tpu.memory_space<vmem>>, vector<1x8x1xf32>,
    } else {
    }
    return
  }
  func.func @transform_0(%arg0: i32, %arg1: i32, %arg2: i32) -> (i32, i32, i32) {
    %c0_i32 = arith.constant 0 : i32
    %c0_i32_0 = arith.constant 0 : i32
    return %arg0, %c0_i32, %arg2 : i32, i32, i32
  }
  func.func @transform_1(%arg0: i32, %arg1: i32, %arg2: i32) -> (i32, i32, i32) {
    %c0_i32 = arith.constant 0 : i32
    return %arg0, %arg1, %arg2 : i32, i32, i32
  }
  func.func @transform_2(%arg0: i32, %arg1: i32, %arg2: i32) -> (i32, i32, i32) {
    %c0_i32 = arith.constant 0 : i32
    %c0_i32_0 = arith.constant 0 : i32
    return %arg0, %arg1, %c0_i32 : i32, i32, i32
  }
  func.func @transform_3(%arg0: i32, %arg1: i32, %arg2: i32) -> (i32, i32, i32) {
    %c0_i32 = arith.constant 0 : i32
    %c0_i32_0 = arith.constant 0 : i32
    return %arg0, %arg1, %c0_i32 : i32, i32, i32
  }
}

</mosaic_0001>

<bundles_post_ra>
// kernel: tpu_custom_call.1
= control target key start
LH: loop header
LB: loop body
LE: loop exit
PB: predicated region body
PF: predicated region fallthrough
CT: control target
= control target key end

     0   :  { %9 = vsyncpa [#allocation5], 0  ;;  %s960_s0 = inlined_call_operand.hbm [shape: f32[2,8,256], index: 0, kind: input, shape index: {}]   ;;  %s961_s1 = inlined_call_operand.hbm [shape: f32[2,8,256], index: 1, kind: input, shape index: {}]   ;;  %s962_s2 = inlined_call_operand.hbm [shape: f32[2,8,8], index: 2, kind: output, shape index: {0}]   ;;  %s963_s3 = inlined_call_operand.vmem [shape: f32[2,8,1], index: 3, kind: output, shape index: {1}]  }
   0x1   :  { %11 = vsyncpa [#allocation5 + $0x1], 0 }
   0x2   :  { %12 = vsyncpa [#allocation8], 0 }
   0x3   :  { %14 = vsyncpa [#allocation8 + $0x1], 0 }
   0x4   :  { %15 = vsyncpa [#allocation6], 0 }
   0x5   :  { %17 = vsyncpa [#allocation6 + $0x1], 0  ;;  %s820_s12 = smov 0   ;;  %s822_s13 = smov 0  }
   0x6   :  { %s824_s14 = smov 0   ;;  %s826_s15 = smov 0  }
   0x7   :  { %s828_s16 = smov 0   ;;  %s830_s17 = smov 0  }
   0x8 LB: > { %s551_s18 = sadd.s32 4294967295, %s795_s17   ;;  %s552_s19 = sadd.s32 4294967294, %s795_s17   ;;  %s795_s17 = sphi %s830_s17, %s23_s17   ;;  %s791_s16 = sphi %s828_s16, %s972_s16   ;;  %s787_s15 = sphi %s826_s15, %s971_s15   ;;  %s783_s14 = sphi %s824_s14, %s970_s14   ;;  %s779_s13 = sphi %s822_s13, %s969_s13   ;;  %s775_s12 = sphi %s820_s12, %s968_s12  }
   0x9   : > { %s42_s20 = sadd.s32 1, %s791_s16  ;;  %s51_s21 = sadd.s32 1, %s783_s14 }
   0xa   : > { %p44_p0 = scmp.ge.s32.totalorder %s42_s20, 2  ;;  %p58_p1 = scmp.ne.s32.totalorder %s783_s14, %s779_s13 }
   0xb   : > { %p59_p2 = scmp.eq.s32.totalorder %s795_s17, 0  ;;  %p64_p3 = scmp.ne.s32.totalorder %s779_s13, %s775_s12 }
   0xc   : > { %s974_s20 = smov (%p44_p0, %s42_s20), 0  ;;  %p65_p5 = scmp.eq.s32.totalorder %s551_s18, 0 }
   0xd   : > { %p861_p4 = por %p59_p2, %p58_p1  ;;  %s46_s23 = ssub.s32 %s791_s16, %s974_s20 }
   0xe   : > { %p120_p6 = scmp.eq.s32.totalorder %s551_s18, 1  ;;  %p49_p7 = scmp.eq.s32.totalorder %s46_s23, 0 }
   0xf   : > { %p867_p8 = por %p65_p5, %p64_p3  ;;  %p126_p10 = scmp.eq.s32.totalorder %s552_s19, 1 }
  0x10   : > { %p871_p9 = por %p120_p6, %p58_p1  ;;  %p554_p12 = scmp.ge.s32.totalorder %s795_s17, 2 }
  0x11   : > { %s876_s26 = scalar_select %p49_p7, %s783_s14, %s51_s21  }
  0x12   : > { %p878_p11 = por %p126_p10, %p64_p3  ;;  %p593_p13 = scmp.lt.s32.totalorder %s795_s17, 2 }
  0x13   : > { %s174_s28 = sand.u32 1, %s783_s14   ;;  %s574_s30 = sshll.u32 %s791_s16, 4 }
  0x14   : > { %s555_s29 = sshll.u32 %s174_s28, 4  ;;  %s185_s6 = scalar_lea.hbm %s960_s0, %s574_s30 }
  0x15   : > { %s178_s7 = scalar_lea.vmem [#allocation4], %s555_s29  ;;  %s187_s9 = sshll.u32 %s185_s6, 4  ;;  %s188_s9 = int_to_ptr.hbm [resolvable:$true] %s187_s9 }
  0x16   : > { %s189_s8 = sshll.u32 %s178_s7, 4  ;;  %p583_p0 = pnand %p593_p13, %p861_p4  ;;  %s190_s8 = int_to_ptr.vmem [resolvable:$true] %s189_s8 }
  0x17   : > { %p561_p1 = scmp.ge.s32.totalorder %s795_s17, 1  ;;  %p218_p2 = scmp.lt.s32.totalorder %s795_s17, 3 }
  0x18   : > { %s175_s10 = scalar_lea.sflag [#allocation5], %s174_s28  ;;  %s209_s19 = scalar_lea.hbm %s961_s1, %s574_s30 }
  0x19   : > { %585 = dma.hbm_to_vmem [thread:$0]  (!%p583_p0), %s188_s9, 256, %s190_s8, %s175_s10  }
  0x1a   : > { %p219_p3 = pnand %p561_p1, %p218_p2  ;;  %s200_s21 = scalar_lea.vmem [#allocation7], %s555_s29 }
  0x1b   : > { %s213_s23 = sshll.u32 %s200_s21, 4  ;;  %s211_s4 = sshll.u32 %s209_s19, 4  ;;  %s214_s23 = int_to_ptr.vmem [resolvable:$true] %s213_s23  ;;  %s212_s4 = int_to_ptr.hbm [resolvable:$true] %s211_s4 }
  0x1c   : > { %s197_s5 = scalar_lea.sflag [#allocation8], %s174_s28  ;;  %222 = sbr.rel (%p219_p3) target bundleno = 306 (0x132), region = 28 }
  0x1d   : > { %588 = dma.hbm_to_vmem [thread:$0]  (!%p583_p0), %s212_s4, 256, %s214_s23, %s197_s5  }
  0x1e   : > { %s897_s22 = sand.u32 (!%p219_p3), 1, %s779_s13  }
  0x1f   : > { %s562_s6 = sshll.u32 (!%p219_p3), %s897_s22, 4  ;;  %s225_s7 = scalar_lea.sflag (!%p219_p3), [#allocation5], %s897_s22 }
  0x20   : > { %s228_s8 = scalar_lea.vmem (!%p219_p3), [#allocation4], %s562_s6 }
  0x21   : > { %762 = dma.done.wait (%p867_p8), %s225_s7, 256  }
  0x22   : > { %764 = vsyncadd (%p867_p8), %s225_s7, 4294967040  ;;  %s235_s29 = scalar_lea.sflag [#allocation8], %s897_s22  ;;  %s238_s28 = scalar_lea.vmem [#allocation7], %s562_s6 }
  0x23   : > { %766 = dma.done.wait (%p867_p8), %s235_s29, 256  }
  0x24   : > { %768 = vsyncadd (%p867_p8), %s235_s29, 4294967040  ;;  %vm287_vm0 = vcmask 64512   ;;  %vm289_vm1 = vcmask 7168   ;;  %v797_v0 = vmov 0.0   ;;  %v293_v1 = vld [vmem:[%s238_s28] sm:$0xff]  ;;  %v294_v2 = vld [vmem:[%s238_s28 + $0x8] sm:$0xff] }
  0x25   : > { %288 = vst.msk [vmem:[#allocation2] sm:$0xff] %vm287_vm0, %v797_v0  ;;  %vm295_vm2 = vcmp.gt.f32.partialorder %v293_v1, 0.0  ;;  %vm296_vm3 = vcmp.gt.f32.partialorder %v294_v2, 0.0  ;;  %v291_v6 = vld [vmem:[%s228_s8] sm:$0xff]  ;;  %v292_v7 = vld [vmem:[%s228_s8 + $0x8] sm:$0xff]  ;;  %v798_v8 = vmov 0  }
  0x26   : > { %290 = vst.msk [vmem:[#allocation3] sm:$0xff] %vm289_vm1, %v797_v0  ;;  %v566_v3 = vsel %vm295_vm2, 1.0, %v797_v0  ;;  %v567_v4 = vsel %vm296_vm3, 1.0, %v797_v0  ;;  %317 = vmatpush.xpose.msra.mxu0 %v291_v6  ;;  %337 = vmatpush.xpose.msra.mxu1 %v292_v7  ;;  %v799_v9 = vmov 1.0   ;;  %p276_p4 = scmp.lt.s32.totalorder %s787_s15, 1  ;;  %s564_s18 = sshll.u32 %s897_s22, 3 }
  0x27   : > { %v346_v5 = vadd.f32 %v567_v4, %v566_v3  ;;  %646 = vset.pattern.permute.xlu0 %v798_v8  ;;  %s571_s19 = sshll.u32 %s787_s15, 3  ;;  %s264_s5 = scalar_lea.vmem [#allocation9], %s564_s18 }
  0x28   : > { %s277_s24 = scalar_select %p276_p4, %s787_s15, 1 }
  0x29   : > { %347 = vadd.xlane.f32.xlu0 %v346_v5  ;;  %568 = vmatmul.msk.f32.vlgmr.msra.gmra.mxu0 %vm295_vm2, %v799_v9  ;;  %s399_s4 = scalar_lea.hbm %s962_s2, %s571_s19  ;;  %s401_s6 = sshll.u32 %s264_s5, 4  ;;  %s402_s6 = int_to_ptr.vmem [resolvable:$true] %s401_s6 }
  0x2a   : > { %569 = vmatmul.msk.f32.vlgmr.msra.gmra.mxu1 %vm296_vm3, %v799_v9  ;;  %s565_s30 = sshll.u32 %s277_s24, 3  ;;  %s403_s7 = sshll.u32 %s399_s4, 4  ;;  %s404_s7 = int_to_ptr.hbm [resolvable:$true] %s403_s7 }
  0x2b   : > { %s282_s11 = scalar_lea.vmem %s963_s3, %s565_s30  ;;  %s381_s8 = scalar_lea.sflag [#allocation6], %s897_s22 }
  0x2c   : > { %v301_v26 = vld [vmem:[#allocation2] sm:$0xff]  ;;  %s723_s29 = sshra.s32 %s404_s7, 4  ;;  %s729_s30 = scalar_lea.hbm %s962_s2, 16  ;;  %s724_s29 = int_to_ptr.hbm [resolvable:$true] %s723_s29 }
  0x2d   : > { %v345_v10 = vld [vmem:[#allocation3] sm:$0xff]  ;;  %s725_s28 = scalar_lea.hbm %s724_s29, 8  ;;  %p730_p8 = scmp.lt.s32.totalorder %s724_s29, %s962_s2 }
  0x2e   : > { %p726_p5 = scmp.ne.s32.totalorder %s724_s29, %s725_s28  ;;  %p731_p10 = scmp.lt.s32.totalorder %s729_s30, %s725_s28 }
  0x30   : > { %p727_p6 = pnand %p726_p5, %p871_p9  ;;  %p732_p13 = por %p731_p10, %p730_p8 }
  0x32   : > { %p728_p7 = pneg %p727_p6 }
  0x34   : > { %p733_p0 = pnand %p732_p13, %p728_p7 }
  0x9c   : > { %v348_v11 = vpop.xlane.xlu0 %347 }
  0x9d   : > { %v349_v12 = vadd.f32 %v348_v11, %v345_v10 }
  0x9f   : > { %351 = vst.msk [vmem:[#allocation3] sm:$0xff] %vm289_vm1, %v349_v12 }
  0xa6   : > { %v355_v13 = vld [vmem:[#allocation3] sm:$0xff]  ;;  %v319_v25 = vpop.f32.mrf.mxu0 }
  0xa7   : > { %v356_v14 = vadd.f32 1e-08, %v355_v13  ;;  %v339_v27 = vpop.f32.mrf.mxu1 }
  0xa8   : > { %v340_v28 = vadd.f32 %v339_v27, %v319_v25 }
  0xa9   : > { %647 = vrcp.f32 %v356_v14  ;;  %379 = vst.msk [vmem:[%s282_s11] sm:$0xff] %vm289_vm1, %v356_v14  ;;  %v368_v18 = vand.u32 2147483648, %v356_v14  ;;  %v366_v20 = vand.u32 2147483647, %v356_v14  ;;  %vm362_vm5 = vweird.f32 %v356_v14 }
  0xaa   : > { %v342_v29 = vadd.f32 %v340_v28, %v301_v26 }
  0xab   : > { %v369_v22 = vor.u32 1.1754944e-38, %v368_v18  ;;  %vm367_vm7 = vcmp.eq.f32.partialorder %v366_v20, 8.507059e+37 }
  0xac   : > { %344 = vst.msk [vmem:[#allocation2] sm:$0xff] %vm287_vm0, %v342_v29 }
  0xaf   : > { %v648_v15 = vpop.eup %647 }
  0xb0   : > { %v358_v16 = vmul.f32 %v648_v15, %v356_v14  ;;  %vm363_vm4 = vweird.f32 %v648_v15 }
  0xb1   : > { %vm364_vm6 = vmor %vm362_vm5, %vm363_vm4 }
  0xb2   : > { %v359_v17 = vsub.f32 1.0, %v358_v16 }
  0xb3   : > { %v371_v30 = vld [vmem:[#allocation2] sm:$0xff] }
  0xb4   : > { %v360_v19 = vmul.f32 %v648_v15, %v359_v17 }
  0xb6   : > { %v361_v21 = vadd.f32 %v648_v15, %v360_v19 }
  0xb8   : > { %v365_v23 = vsel %vm364_vm6, %v648_v15, %v361_v21 }
  0xb9   : > { %v370_v24 = vsel %vm367_vm7, %v369_v22, %v365_v23 }
  0xba   : > { %374 = vperm.xlu0 %646, %v370_v24  }
 0x12c   : > { %v375_v31 = vpop.permute.xlu0 %374 }
 0x12d   : > { %v377_v32 = vmul.f32 %v375_v31, %v371_v30 }
 0x12f   : > { %378 = vst.msk [vmem:[%s264_s5] sm:$0xff] %vm287_vm0, %v377_v32 }
 0x130   : > { %736 = shalt.err (!%p733_p0)
}
 0x131   : > { %580 = dma.vmem_to_hbm [thread:$0]  (%p871_p9), %s402_s6, 128, %s404_s7, %s381_s8  }
 0x132 PF: > { %s418_s22 = sand.u32 1, %s775_s12   ;;  %p590_p1 = pnand %p554_p12, %p878_p11 }
 0x133   : > { %s419_s11 = scalar_lea.sflag [#allocation6], %s418_s22 }
 0x134   : > { %p591_p2 = pneg %p590_p1 }
 0x136   : > { %770 = dma.done.wait (%p591_p2), %s419_s11, 128  }
 0x137   : > { %772 = vsyncadd (%p591_p2), %s419_s11, 4294967168  ;;  %s23_s17 = sadd.s32 1, %s795_s17   ;;  %s968_s12 = smov %s779_s13 }
 0x138   : > { %p20_p3 = scmp.ge.s32.totalorder %s23_s17, 4   ;;  %s969_s13 = smov %s783_s14 }
 0x139   : > { %s970_s14 = smov %s876_s26  ;;  %s971_s15 = smov %s791_s16 }
 0x13a   : > { %s972_s16 = smov %s974_s20  ;;  %22 = sbr.rel (!%p20_p3) target bundleno = 8 (0x8), region = 106 }
 0x13f   :  { %435 = vsyncpa [#allocation5], 1 }
 0x140   :  { %437 = vsyncpa [#allocation5 + $0x1], 1 }
 0x141   :  { %438 = vsyncpa [#allocation8], 1 }
 0x142   :  { %440 = vsyncpa [#allocation8 + $0x1], 1 }
 0x143   :  { %441 = vsyncpa [#allocation6], 1 }
 0x144   :  { %443 = vsyncpa [#allocation6 + $0x1], 1 }

</bundles_post_ra>
